<compile_context>
chip_gen: v7x
topology: tpu7x:2x2x1
jax: 0.10.0
libtpu: 0.0.40
codegen_flags: <defaults>
</compile_context>

<pallas_src>
import functools

import jax
import jax.numpy as jnp
from jax import lax
from jax.experimental import pallas as pl
from jax.experimental.pallas import tpu as pltpu


def _gather_matmul_kernel(src_ref, x_ref, o_ref):
    """Vectorized row-select for one block of `bb` batch rows (MXU one-hot).

    src_ref: VMEM (bb, T_out, 1) int32  source row index for every output row
    x_ref:   VMEM (bb, T, Dp)           all tokens (prefix included)
    o_ref:   VMEM (bb, T_out, Dp)       prefix + kept tokens
    """
    bb, t_out, _ = src_ref.shape
    t = x_ref.shape[1]

    src = src_ref[...]                                       # (bb, T_out, 1)
    iota = lax.broadcasted_iota(jnp.int32, (bb, t_out, t), 2)
    # One-hot selection matrix.  1.0 / 0.0 are exact in bf16 and the MXU
    # accumulates in f32, so the matmul reproduces gathered values bit-exactly
    # for finite inputs.
    # NOTE: non-finite values in *dropped* tokens would propagate (0 * NaN) on
    # this path; the 32-bit path below is a pure copy and has no such caveat.
    onehot = jnp.where(iota == src, 1.0, 0.0).astype(x_ref.dtype)
    gathered = jnp.einsum("bkt,btd->bkd", onehot, x_ref[...],
                          preferred_element_type=jnp.float32)
    o_ref[...] = gathered.astype(o_ref.dtype)


def _gather_loop_kernel(src_ref, x_ref, o_ref, *, bb, unroll):
    """Exact row-copy gather (used for 32-bit / other dtypes).

    src_ref: SMEM (B, T_out) int32 (scalar-prefetched, full array)
    x_ref:   VMEM (bb, T, Dp)
    o_ref:   VMEM (bb, T_out, Dp)
    """
    blk = pl.program_id(0)
    t_out = o_ref.shape[1]

    def body(j, carry):
        for r in range(bb):                       # static unroll over batch rows
            s = src_ref[blk * bb + r, j]          # SMEM scalar read
            o_ref[r, pl.ds(j, 1), :] = x_ref[r, pl.ds(s, 1), :]
        return carry

    lax.fori_loop(0, t_out, body, 0, unroll=unroll)


def _pick_rows_per_block(B, bytes_per_row):
    """Batch rows per grid step: amortize per-step overhead, keep the
    double-buffered footprint small, keep >=2 grid steps for megacore."""
    budget = 4 * 1024 * 1024                      # per in+out block pair
    bb = max(1, min(B, budget // max(bytes_per_row, 1)))
    while B % bb:                                 # make bb divide B
        bb -= 1
    if B > 1 and bb == B:                         # leave work for both cores
        bb = max(d for d in range(1, B // 2 + 1) if B % d == 0)
    return bb


def _patch_dropout_gather(x, src_indices):
    """x: (B, T, D); src_indices: (B, T_out) int32 row indices into the token
    axis (prefix rows already included).  Returns (B, T_out, D)."""
    B, T, D = x.shape
    T_out = src_indices.shape[1]
    dtype = x.dtype
    itemsize = jnp.dtype(dtype).itemsize

    # Lane-dense feature dim: pad to a multiple of 128 (sliced off afterwards).
    Dp = max(128, ((D + 127) // 128) * 128)
    if Dp != D:
        x = jnp.pad(x, ((0, 0), (0, 0), (0, Dp - D)))

    bytes_per_row = (T + T_out) * Dp * itemsize
    bb = _pick_rows_per_block(B, bytes_per_row)
    n_blocks = B // bb

    use_mxu = dtype == jnp.bfloat16               # vectorized one-hot gather
    cost = pl.CostEstimate(
        flops=(2 * B * T_out * T * Dp) if use_mxu else 0,
        transcendentals=0,
        bytes_accessed=(B * T * Dp + B * T_out * Dp) * itemsize + B * T_out * 4,
    )
    cparams = pltpu.CompilerParams(
        dimension_semantics=("parallel",),
        vmem_limit_bytes=32 * 1024 * 1024,
    )
    out_shape = jax.ShapeDtypeStruct((B, T_out, Dp), dtype)
    src_indices = src_indices.astype(jnp.int32)

    if use_mxu:
        out = pl.pallas_call(
            _gather_matmul_kernel,
            out_shape=out_shape,
            grid=(n_blocks,),
            in_specs=[
                pl.BlockSpec((bb, T_out, 1), lambda b: (b, 0, 0)),
                pl.BlockSpec((bb, T, Dp), lambda b: (b, 0, 0)),
            ],
            out_specs=pl.BlockSpec((bb, T_out, Dp), lambda b: (b, 0, 0)),
            compiler_params=cparams,
            cost_estimate=cost,
        )(src_indices.reshape(B, T_out, 1), x)
    else:
        kernel = functools.partial(
            _gather_loop_kernel, bb=bb, unroll=(True if T_out <= 16 else 8))
        out = pl.pallas_call(
            kernel,
            out_shape=out_shape,
            grid_spec=pltpu.PrefetchScalarGridSpec(
                num_scalar_prefetch=1,
                grid=(n_blocks,),
                in_specs=[pl.BlockSpec((bb, T, Dp), lambda b, src: (b, 0, 0))],
                out_specs=pl.BlockSpec((bb, T_out, Dp),
                                       lambda b, src: (b, 0, 0)),
            ),
            compiler_params=cparams,
            cost_estimate=cost,
        )(src_indices, x)

    if Dp != D:
        out = out[..., :D]
    return out


def patch_dropout_forward(x, key, *, prob=0.5, num_prefix_tokens=1,
                          ordered=False, return_indices=False, training=True):
    """Equivalent of PatchDropout.forward.

    x: (B, T, D) tokens (prefix tokens first).  key: jax PRNG key for the
    random keep selection (stand-in for torch.randn; RNG stream differs)."""
    assert 0 <= prob < 1.0
    if (not training) or prob == 0.0:
        return (x, None) if return_indices else x

    B, T, D = x.shape
    P = num_prefix_tokens
    L = T - P
    num_keep = max(1, int(L * (1.0 - prob)))

    # argsort(randn) == random permutation; take first num_keep.
    noise = jax.random.normal(key, (B, L))
    keep_indices = jnp.argsort(noise, axis=-1)[:, :num_keep].astype(jnp.int32)
    if ordered:
        keep_indices = jnp.sort(keep_indices, axis=-1)

    # Absolute source-row indices (prefix rows + kept token rows).
    if P > 0:
        prefix_src = jnp.broadcast_to(
            jnp.arange(P, dtype=jnp.int32)[None, :], (B, P))
        src = jnp.concatenate([prefix_src, keep_indices + P], axis=1)
    else:
        src = keep_indices

    out = _patch_dropout_gather(x, src)

    return (out, keep_indices) if return_indices else out


if __name__ == "__main__":
    # Small shapes consistent with the module: B=2 sequences of 1 prefix (cls)
    # token + 8 patch tokens, hidden dim 32, prob=0.5.
    B, D = 2, 32
    num_prefix = 1
    L = 8
    T = num_prefix + L
    prob = 0.5
    num_keep = max(1, int(L * (1.0 - prob)))

    key = jax.random.PRNGKey(0)
    kx, kdrop = jax.random.split(key)
    x_f32 = jax.random.normal(kx, (B, T, D), dtype=jnp.float32)
    x_bf16 = x_f32.astype(jnp.bfloat16)

    def ref_gather(x, keep_idx):
        prefix = x[:, :num_prefix]
        tokens = x[:, num_prefix:]
        idx_full = jnp.broadcast_to(keep_idx[..., None],
                                    (B, num_keep, x.shape[-1]))
        gathered = jnp.take_along_axis(tokens, idx_full, axis=1)
        return jnp.concatenate([prefix, gathered], axis=1)

    # bf16 -> vectorized one-hot MXU gather path (exact for finite values).
    out_bf, idx_bf = patch_dropout_forward(
        x_bf16, kdrop, prob=prob, num_prefix_tokens=num_prefix,
        ordered=False, return_indices=True, training=True)
    out_bf = jax.block_until_ready(out_bf)
    assert out_bf.shape == (B, num_prefix + num_keep, D)
    assert out_bf.dtype == jnp.bfloat16
    assert idx_bf.shape == (B, num_keep)
    assert jnp.array_equal(out_bf, ref_gather(x_bf16, idx_bf))

    # f32 -> unrolled dynamic-slice copy path (pure copy, exact).
    out_f32, idx_f32 = patch_dropout_forward(
        x_f32, kdrop, prob=prob, num_prefix_tokens=num_prefix,
        ordered=True, return_indices=True, training=True)
    out_f32 = jax.block_until_ready(out_f32)
    assert out_f32.shape == (B, num_prefix + num_keep, D)
    assert jnp.array_equal(out_f32, ref_gather(x_f32, idx_f32))
    assert jnp.array_equal(idx_f32, jnp.sort(idx_f32, axis=-1))  # ordered=True

    # Eval / prob==0 path is the identity.
    out_eval = patch_dropout_forward(
        x_f32, kdrop, prob=prob, num_prefix_tokens=num_prefix, training=False)
    assert jnp.array_equal(out_eval, x_f32)

    print("KERNEL_OK")
</pallas_src>

<mosaic_0001>
module attributes {stable_mosaic.version = 11 : i64} {
  func.func @_gather_matmul_kernel(%arg0: i32, %arg1: memref<1x5x1xi32, #tpu.memory_space<vmem>>, %arg2: memref<1x9x128xbf16, #tpu.memory_space<vmem>>, %arg3: memref<1x5x128xbf16, #tpu.memory_space<vmem>>) attributes {dimension_semantics = [#tpu.dimension_semantics<parallel>], iteration_bounds = array<i64: 2>, scalar_prefetch = 0 : i64, scratch_operands = 0 : i64, tpu.core_type = #tpu.core_type<tc>, window_params = [{transform_indices = @transform_0, window_bounds = array<i64: 1, 5, 1>}, {transform_indices = @transform_1, window_bounds = array<i64: 1, 9, 128>}, {transform_indices = @transform_2, window_bounds = array<i64: 1, 5, 128>}]} {
    %c0 = arith.constant 0 : index
    %c0_0 = arith.constant 0 : index
    %c0_1 = arith.constant 0 : index
    %0 = vector.load %arg1[%c0, %c0_0, %c0_1] : memref<1x5x1xi32, #tpu.memory_space<vmem>>, vector<1x5x1xi32>
    %1 = tpu.iota {dimensions = array<i32: 2>} : vector<1x5x9xi32>
    %2 = vector.broadcast %0 : vector<1x5x1xi32> to vector<1x5x9xi32>
    %3 = arith.cmpi eq, %1, %2 : vector<1x5x9xi32>
    %cst = arith.constant 1.000000e+00 : f32
    %cst_2 = arith.constant 0.000000e+00 : f32
    %4 = vector.broadcast %cst : f32 to vector<1x5x9xf32>
    %5 = vector.broadcast %cst_2 : f32 to vector<1x5x9xf32>
    %6 = arith.select %3, %4, %5 : vector<1x5x9xi1>, vector<1x5x9xf32>
    %7 = arith.truncf %6 : vector<1x5x9xf32> to vector<1x5x9xbf16>
    %c0_3 = arith.constant 0 : index
    %c0_4 = arith.constant 0 : index
    %c0_5 = arith.constant 0 : index
    %8 = vector.load %arg2[%c0_3, %c0_4, %c0_5] : memref<1x9x128xbf16, #tpu.memory_space<vmem>>, vector<1x9x128xbf16>
    "tpu.trace_start"() <{level = 10 : i32, message = "bkt,btd->bkd"}> : () -> ()
    %cst_6 = arith.constant dense<0.000000e+00> : vector<1x5x128xf32>
    %9 = tpu.matmul %7, %8, %cst_6 {dimension_numbers = #tpu.dot_dimension_numbers<[2], [1], [1], [2], [0, 0, 0, 1, 1, 2], [0], [0]>} : vector<1x5x9xbf16>, vector<1x9x128xbf16>, vector<1x5x128xf32> -> vector<1x5x128xf32>
    "tpu.trace_stop"() : () -> ()
    %10 = arith.truncf %9 : vector<1x5x128xf32> to vector<1x5x128xbf16>
    %c0_7 = arith.constant 0 : index
    %c0_8 = arith.constant 0 : index
    %c0_9 = arith.constant 0 : index
    %11 = vector.load %arg3[%c0_7, %c0_8, %c0_9] : memref<1x5x128xbf16, #tpu.memory_space<vmem>>, vector<1x5x128xbf16>
    tpu.vector_store %arg3[%c0_7, %c0_8, %c0_9], %10 {strides = array<i32>} : memref<1x5x128xbf16, #tpu.memory_space<vmem>>, vector<1x5x128xbf16>,
    return
  }
  func.func @transform_0(%arg0: i32) -> (i32, i32, i32) {
    %c0_i32 = arith.constant 0 : i32
    %c0_i32_0 = arith.constant 0 : i32
    %c0_i32_1 = arith.constant 0 : i32
    return %arg0, %c0_i32, %c0_i32_0 : i32, i32, i32
  }
  func.func @transform_1(%arg0: i32) -> (i32, i32, i32) {
    %c0_i32 = arith.constant 0 : i32
    %c0_i32_0 = arith.constant 0 : i32
    %c0_i32_1 = arith.constant 0 : i32
    return %arg0, %c0_i32, %c0_i32_0 : i32, i32, i32
  }
  func.func @transform_2(%arg0: i32) -> (i32, i32, i32) {
    %c0_i32 = arith.constant 0 : i32
    %c0_i32_0 = arith.constant 0 : i32
    %c0_i32_1 = arith.constant 0 : i32
    return %arg0, %c0_i32, %c0_i32_0 : i32, i32, i32
  }
}

</mosaic_0001>

<bundles_post_ra>
// kernel: tpu_custom_call.1
= control target key start
LH: loop header
LB: loop body
LE: loop exit
PB: predicated region body
PF: predicated region fallthrough
CT: control target
= control target key end

     0   :  { %s362_s9 = smov 0   ;;  %s382_s0 = inlined_call_operand.vmem [shape: s32[2,5,1], index: 0, kind: input, shape index: {}]   ;;  %s383_s1 = inlined_call_operand.vmem [shape: bf16[2,9,128], index: 1, kind: input, shape index: {}]   ;;  %s384_s2 = inlined_call_operand.vmem [shape: bf16[2,5,128], index: 2, kind: output, shape index: {}]  }
   0x1 LB: > { %s299_s10 = sadd.s32 4294967295, %s341_s9   ;;  %p303_p0 = scmp.ge.s32.totalorder %s341_s9, 1  ;;  %s341_s9 = sphi %s362_s9, %s12_s9  }
   0x2   : > { %p121_p1 = scmp.lt.s32.totalorder %s341_s9, 3 }
   0x4   : > { %p122_p2 = pnand %p303_p0, %p121_p1 }
   0x5   : > { %p146_p3 = scmp.lt.s32.totalorder (!%p122_p2), %s299_s10, 1  ;;  %v343_v0 = vmov (!%p122_p2), 0   ;;  %v344_v1 = vmov (!%p122_p2), 0.0   ;;  %vm180_vm0 = vcmask (!%p122_p2), 1043456   ;;  %vm181_vm1 = vcmask (!%p122_p2), 1044480  }
   0x6   : > { %125 = sbr.rel (%p122_p2) target bundleno = 365 (0x16d), region = 28  ;;  %333 = vset.pattern.permute.xlu0 (!%p122_p2), %v343_v0  ;;  %315 = vmatprep.subr.bf16.mxu0 (!%p122_p2), %v344_v1  ;;  %v345_v2 = vmov (!%p122_p2), 65535   ;;  %vm346_vm2 = vmmov (!%p122_p2), 0   ;;  %v161_v8 = vlaneseq (!%p122_p2)  ;;  %vm176_vm4 = vcmask (!%p122_p2), 72704  }
   0x7   : > { %v182_v3 = vsel (!%p122_p2), %vm180_vm0, 4294967295, %v345_v2  ;;  %317 = vmatprep.mubr.msk.bf16.mxu0 (!%p122_p2), %vm346_vm2, %v344_v1  ;;  %vm228_vm5 = vcmask (!%p122_p2), 1042432   ;;  %vm229_vm6 = vsmask.f32 (!%p122_p2), 2304 }
   0x8   : > { %v183_v4 = vsel (!%p122_p2), %vm181_vm1, %v182_v3, 0  ;;  %v162_v9 = vand.u32 (!%p122_p2), 127, %v161_v8  ;;  %vm230_vm7 = vmand (!%p122_p2), %vm228_vm5, %vm229_vm6 }
   0xd   : > { %s386_s10 = smov (!%p146_p3, %s299_s10), 1 }
   0xe   : > { %s304_s11 = sshll.u32 %s386_s10, 3  ;;  %s307_s18 = sshll.u32 %s386_s10, 2 }
   0xf   : > { %s149_s14 = scalar_lea.vmem %s382_s0, %s304_s11  ;;  %s154_s17 = scalar_lea.vmem %s383_s1, %s304_s11 }
  0x10   : > { %v160_v5 = vld [vmem:[%s149_s14] sm:$0x1f]  ;;  %s158_s21 = scalar_lea.vmem %s384_s2, %s307_s18 }
  0x11   : > { %164 = vperm.xlu0 %333, %v160_v5   ;;  %v334_v6 = vld [vmem:[%s154_s17] sm:$0x1f]  }
  0x12   : > { %v185_v7 = vand.u32 %v334_v6, %v183_v4  ;;  %v231_v13 = vld [vmem:[%s158_s21] sm:$0x7] }
  0x14   : > { %316 = vmatpush3.bf16.msra.mxu0 %v185_v7 }
  0x90   : > { %v165_v10 = vpop.permute.xlu0 %164 }
  0x91   : > { %vm166_vm3 = vcmp.eq.s32.totalorder %v162_v9, %v165_v10 }
  0x92   : > { %v167_v11 = vsel %vm166_vm3, 1.0, %v344_v1 }
  0x93   : > { %v168_v12 = vpack.c.bf16 %v167_v11, %v167_v11 }
  0x95   : > { %318 = vmatmul.mubr.msk.bf16.vlgmr.msra.gmra.mrb[0].mxu0 %vm176_vm4, %v168_v12 }
 0x168   : > { %v221_v14 = vpop.f32.mrb[0].mxu0 }
 0x169   : > { %v227_v15 = vpack.c.bf16 %v221_v14, %v221_v14  ;;  %v319_v16 = vpop.f32.mrb[1].mxu0 }
 0x16a   : > { %v224_v17 = vpop.f32.mrb[2].mxu0 }
 0x16b   : > { %v232_v18 = vsel %vm230_vm7, %v227_v15, %v231_v13  ;;  %v320_v19 = vpop.f32.mrb[3].mxu0 }
 0x16c   : > { %233 = vst [vmem:[%s158_s21] sm:$0x7] %v232_v18 }
 0x16d PF: > { %s12_s9 = sadd.s32 1, %s341_s9  }
 0x16e   : > { %p9_p4 = scmp.ge.s32.totalorder %s12_s9, 4  }
 0x170   :  { %11 = sbr.rel (!%p9_p4) target bundleno = 1 (0x1), region = 61 }

</bundles_post_ra>
